<compile_context>
chip_gen: v7x
topology: tpu7x:2x2x1
jax: 0.10.0
libtpu: 0.0.40
codegen_flags: <defaults>
</compile_context>

<pallas_src>
import functools

import jax
import jax.numpy as jnp
from jax.experimental import pallas as pl
from jax.experimental.pallas import tpu as pltpu

LN_EPS = 1e-5
LANE = 128
ROW_TILE = 16                      # bf16 packs 2 rows / sublane -> 16-row batch tiles
COMPUTE_DTYPE = jnp.bfloat16       # full-rate MXU path on v5e / v6e / v7x


def _round_up(n, m):
    return ((n + m - 1) // m) * m


def _pad_to(a, shape):
    pads = [(0, t - s) for s, t in zip(a.shape, shape)]
    return jnp.pad(a, pads)


def _vmem_capacity_bytes():
    """Physical per-core VMEM; conservative 64 MiB (v7x) if the query is unavailable."""
    try:
        info = pltpu.get_tpu_info()
        cap = getattr(info, "vmem_capacity_bytes", None)
        if cap:
            return int(cap)
    except Exception:
        pass
    return 64 << 20


def _layer_norm_padded(h, gamma, beta, d_true, d_pad):
    """LayerNorm over the last axis of an f32 [bm, d_pad] block whose padded columns
    (indices >= d_true) are exactly zero.  Matches PyTorch LayerNorm on the first d_true
    features (biased variance, eps inside sqrt).  Padded gamma/beta are zero, so padded
    output features stay exactly zero."""
    inv_d = 1.0 / float(d_true)
    mu = jnp.sum(h, axis=-1, keepdims=True) * inv_d          # padded cols contribute 0
    diff = h - mu
    ssq = jnp.sum(diff * diff, axis=-1, keepdims=True)
    if d_pad > d_true:
        # each padded column contributes mu^2 to sum(diff^2); subtract that out.
        ssq = ssq - float(d_pad - d_true) * mu * mu
    var = jnp.maximum(ssq * inv_d, 0.0)
    inv = jax.lax.rsqrt(var + LN_EPS)
    return diff * inv * gamma.astype(jnp.float32) + beta.astype(jnp.float32)


def fnn_kernel(x_ref,
               w1_ref, b1_ref, g1_ref, be1_ref,
               w2_ref, b2_ref, g2_ref, be2_ref,
               w3_ref, b3_ref,
               o_ref,
               *, d_h1, d_h2, d_h1_pad, d_h2_pad):
    # Matmul operands are bf16; MXU accumulates in f32 via preferred_element_type.
    x = x_ref[...]

    # fc1 -> ln1 -> relu            (dropout1 == identity at inference)
    h = jnp.dot(x, w1_ref[...], preferred_element_type=jnp.float32)
    h = h + b1_ref[...].astype(jnp.float32)
    h = _layer_norm_padded(h, g1_ref[...], be1_ref[...], d_h1, d_h1_pad)
    h = jnp.maximum(h, 0.0).astype(COMPUTE_DTYPE)

    # fc2 -> ln2 -> relu            (dropout2 == identity at inference)
    h = jnp.dot(h, w2_ref[...], preferred_element_type=jnp.float32)
    h = h + b2_ref[...].astype(jnp.float32)
    h = _layer_norm_padded(h, g2_ref[...], be2_ref[...], d_h2, d_h2_pad)
    h = jnp.maximum(h, 0.0).astype(COMPUTE_DTYPE)

    # fc3
    out = jnp.dot(h, w3_ref[...], preferred_element_type=jnp.float32)
    out = out + b3_ref[...].astype(jnp.float32)
    o_ref[...] = out.astype(o_ref.dtype)


def prepare_fnn_params(params):
    """Pad/cast the weights ONCE (call outside the forward path and reuse the result).

    Weights -> bf16, lane-padded; bias/gamma/beta -> f32, lane-padded with zeros so padded
    hidden features stay exactly zero through LN."""
    (w1, b1, g1, be1, w2, b2, g2, be2, w3, b3) = params
    d_in, d_h1 = w1.shape
    d_h2 = w2.shape[1]
    d_out = w3.shape[1]

    d_in_p = _round_up(d_in, LANE)
    d_h1_p = _round_up(d_h1, LANE)
    d_h2_p = _round_up(d_h2, LANE)
    d_out_p = _round_up(d_out, LANE)

    cd, f32 = COMPUTE_DTYPE, jnp.float32
    padded = (
        _pad_to(w1.astype(cd), (d_in_p, d_h1_p)),
        _pad_to(b1.astype(f32).reshape(1, -1), (1, d_h1_p)),
        _pad_to(g1.astype(f32).reshape(1, -1), (1, d_h1_p)),
        _pad_to(be1.astype(f32).reshape(1, -1), (1, d_h1_p)),
        _pad_to(w2.astype(cd), (d_h1_p, d_h2_p)),
        _pad_to(b2.astype(f32).reshape(1, -1), (1, d_h2_p)),
        _pad_to(g2.astype(f32).reshape(1, -1), (1, d_h2_p)),
        _pad_to(be2.astype(f32).reshape(1, -1), (1, d_h2_p)),
        _pad_to(w3.astype(cd), (d_h2_p, d_out_p)),
        _pad_to(b3.astype(f32).reshape(1, -1), (1, d_out_p)),
    )
    padded = tuple(jax.block_until_ready(p) for p in padded)
    meta = dict(d_in=d_in, d_h1=d_h1, d_h2=d_h2, d_out=d_out,
                d_in_p=d_in_p, d_h1_p=d_h1_p, d_h2_p=d_h2_p, d_out_p=d_out_p)
    return padded, meta


def fnn_forward(x, prepared, *, block_m=None):
    """Full FNN forward in one pallas_call: batch-tiled x/out, resident lane-padded params."""
    padded, meta = prepared
    B, d_in = x.shape
    assert d_in == meta["d_in"]
    d_h1, d_h2, d_out = meta["d_h1"], meta["d_h2"], meta["d_out"]
    d_in_p, d_h1_p = meta["d_in_p"], meta["d_h1_p"]
    d_h2_p, d_out_p = meta["d_h2_p"], meta["d_out_p"]

    out_dtype = x.dtype
    out_itemsize = jnp.dtype(out_dtype).itemsize
    cd_itemsize = jnp.dtype(COMPUTE_DTYPE).itemsize

    # ---- batch tile: bf16-packed (16-row) tiles, >=2 grid steps for megacore/pipeline ----
    if block_m is None:
        if B <= 2 * ROW_TILE:
            bm = ROW_TILE if B <= ROW_TILE else 2 * ROW_TILE
        else:
            # >=4 grid steps when there is enough work: feeds both v7x TCs ("parallel" axis)
            # and lets the BlockSpec pipeline overlap x/out DMA with compute.
            steps = 4 if B >= 4 * ROW_TILE else 2
            bm = min(512, max(ROW_TILE, _round_up(pl.cdiv(B, steps), ROW_TILE)))
    else:
        bm = max(ROW_TILE, _round_up(block_m, ROW_TILE))

    # ---- generation-aware VMEM plan (v5e/v6e: ~108 MiB cap, v7x: ~54 MiB cap) ----
    cap = int(_vmem_capacity_bytes() * 0.85)            # headroom for Mosaic scratch / sems
    w_bytes = (d_in_p * d_h1_p + d_h1_p * d_h2_p + d_h2_p * d_out_p) * cd_itemsize
    vec_bytes = (3 * d_h1_p + 3 * d_h2_p + d_out_p) * 4

    def _needed(bm_):
        io = 2 * bm_ * d_in_p * cd_itemsize + 2 * bm_ * d_out_p * out_itemsize   # dbl-buffered tiles
        act = bm_ * (d_h1_p + d_h2_p + d_out_p) * 4      # f32 LN intermediates + fc3 accumulator
        act += bm_ * (d_h1_p + d_h2_p) * cd_itemsize     # bf16 re-cast activations
        return w_bytes + vec_bytes + io + act + (4 << 20)

    while _needed(bm) > cap and bm > ROW_TILE:
        bm = max(ROW_TILE, _round_up(bm // 2, ROW_TILE))
    vmem_limit = int(min(max(_needed(bm), 32 << 20), cap))

    B_p = _round_up(B, bm)
    grid = (B_p // bm,)

    # x: cast to bf16 (full-rate MXU) + zero-pad.  For lane-aligned d_in and bm-aligned B
    # the pads are no-ops; otherwise only the (small) boundary is materialized.
    x_p = _pad_to(x.astype(COMPUTE_DTYPE), (B_p, d_in_p))

    flops = 2 * B_p * (d_in_p * d_h1_p + d_h1_p * d_h2_p + d_h2_p * d_out_p)
    bytes_accessed = (x_p.size * cd_itemsize + w_bytes + vec_bytes
                      + B_p * d_out_p * out_itemsize)
    cost = pl.CostEstimate(flops=flops, transcendentals=2 * B_p,
                           bytes_accessed=bytes_accessed)

    # Params: untiled, resident in VMEM once (no double-buffering for constant blocks).
    param_spec = pl.BlockSpec(memory_space=pltpu.MemorySpace.VMEM)

    kernel = functools.partial(fnn_kernel, d_h1=d_h1, d_h2=d_h2,
                               d_h1_pad=d_h1_p, d_h2_pad=d_h2_p)

    out_p = pl.pallas_call(
        kernel,
        out_shape=jax.ShapeDtypeStruct((B_p, d_out_p), out_dtype),
        grid_spec=pltpu.PrefetchScalarGridSpec(
            num_scalar_prefetch=0,
            grid=grid,
            in_specs=[
                pl.BlockSpec((bm, d_in_p), lambda i: (i, 0)),      # x: batch-tiled, pipelined
                param_spec, param_spec, param_spec, param_spec,    # w1, b1, gamma1, beta1
                param_spec, param_spec, param_spec, param_spec,    # w2, b2, gamma2, beta2
                param_spec, param_spec,                            # w3, b3
            ],
            out_specs=pl.BlockSpec((bm, d_out_p), lambda i: (i, 0)),
        ),
        compiler_params=pltpu.CompilerParams(
            dimension_semantics=("parallel",),
            vmem_limit_bytes=vmem_limit,
        ),
        cost_estimate=cost,
    )(x_p, *padded)

    return out_p[:B, :d_out]


# ------------------------- reference & test harness -------------------------

def _layer_norm_ref(h, gamma, beta):
    mu = jnp.mean(h, axis=-1, keepdims=True)
    var = jnp.mean((h - mu) * (h - mu), axis=-1, keepdims=True)
    return (h - mu) * jax.lax.rsqrt(var + LN_EPS) * gamma + beta


def fnn_reference_f32(x, params):
    (w1, b1, g1, be1, w2, b2, g2, be2, w3, b3) = params
    h1 = jnp.maximum(_layer_norm_ref(x @ w1 + b1, g1, be1), 0.0)
    h2 = jnp.maximum(_layer_norm_ref(h1 @ w2 + b2, g2, be2), 0.0)
    return h2 @ w3 + b3


def fnn_reference_bf16(x, params):
    """Mirror of the kernel's numerics: bf16 matmul operands, f32 accumulation, f32 LN."""
    (w1, b1, g1, be1, w2, b2, g2, be2, w3, b3) = params
    cd, f32 = COMPUTE_DTYPE, jnp.float32
    h = jnp.dot(x.astype(cd), w1.astype(cd), preferred_element_type=f32) + b1.astype(f32)
    h = _layer_norm_ref(h, g1.astype(f32), be1.astype(f32))
    h = jnp.maximum(h, 0.0).astype(cd)
    h = jnp.dot(h, w2.astype(cd), preferred_element_type=f32) + b2.astype(f32)
    h = _layer_norm_ref(h, g2.astype(f32), be2.astype(f32))
    h = jnp.maximum(h, 0.0).astype(cd)
    out = jnp.dot(h, w3.astype(cd), preferred_element_type=f32) + b3.astype(f32)
    return out


def init_params(key, d_in, d_h1, d_h2, d_out, dtype=jnp.float32):
    """Deterministic synthetic init (shapes match nn.Linear / nn.LayerNorm)."""
    ks = jax.random.split(key, 6)
    w1 = jax.random.normal(ks[0], (d_in, d_h1), dtype) * (1.0 / jnp.sqrt(d_in))
    b1 = jax.random.normal(ks[1], (1, d_h1), dtype) * 0.01
    w2 = jax.random.normal(ks[2], (d_h1, d_h2), dtype) * (1.0 / jnp.sqrt(d_h1))
    b2 = jax.random.normal(ks[3], (1, d_h2), dtype) * 0.01
    w3 = jax.random.normal(ks[4], (d_h2, d_out), dtype) * (1.0 / jnp.sqrt(d_h2))
    b3 = jax.random.normal(ks[5], (1, d_out), dtype) * 0.01
    g1 = jnp.ones((1, d_h1), dtype)
    be1 = jnp.zeros((1, d_h1), dtype)
    g2 = jnp.ones((1, d_h2), dtype)
    be2 = jnp.zeros((1, d_h2), dtype)
    return (w1, b1, g1, be1, w2, b2, g2, be2, w3, b3)


if __name__ == "__main__":
    key = jax.random.PRNGKey(0)
    k_x, k_p = jax.random.split(key)

    # Small shapes consistent with the module: batch=8, d_in=32, d_h1=64, d_h2=64, d_out=16.
    B, d_in, d_h1, d_h2, d_out = 8, 32, 64, 64, 16
    x = jax.random.normal(k_x, (B, d_in), jnp.float32)
    params = init_params(k_p, d_in, d_h1, d_h2, d_out)

    # Pad/cast weights ONCE; reuse across forward calls.
    prepared = prepare_fnn_params(params)

    out = fnn_forward(x, prepared)
    out = jax.block_until_ready(out)
    assert out.shape == (B, d_out)

    # Tight check against a reference that mirrors the kernel's bf16/f32 mixed precision.
    ref_bf16 = fnn_reference_bf16(x, params)
    assert jnp.allclose(out.astype(jnp.float32), ref_bf16, atol=2e-2, rtol=2e-2), \
        "mismatch vs bf16-mirrored reference"
    # Loose sanity check against the pure-f32 reference (bf16 MXU rounding expected).
    ref_f32 = fnn_reference_f32(x, params)
    assert jnp.allclose(out.astype(jnp.float32), ref_f32, atol=1e-1, rtol=1e-1), \
        "mismatch vs f32 reference"

    # TODO(synk): dropout is identity at inference; training-mode dropout would need pltpu.prng_*.
    print("KERNEL_OK")
</pallas_src>

<mosaic_0001>
module attributes {stable_mosaic.version = 11 : i64} {
  func.func @fnn_kernel(%arg0: i32, %arg1: memref<16x128xbf16, #tpu.memory_space<vmem>>, %arg2: memref<128x128xbf16, #tpu.memory_space<vmem>>, %arg3: memref<1x128xf32, #tpu.memory_space<vmem>>, %arg4: memref<1x128xf32, #tpu.memory_space<vmem>>, %arg5: memref<1x128xf32, #tpu.memory_space<vmem>>, %arg6: memref<128x128xbf16, #tpu.memory_space<vmem>>, %arg7: memref<1x128xf32, #tpu.memory_space<vmem>>, %arg8: memref<1x128xf32, #tpu.memory_space<vmem>>, %arg9: memref<1x128xf32, #tpu.memory_space<vmem>>, %arg10: memref<128x128xbf16, #tpu.memory_space<vmem>>, %arg11: memref<1x128xf32, #tpu.memory_space<vmem>>, %arg12: memref<16x128xf32, #tpu.memory_space<vmem>>) attributes {dimension_semantics = [#tpu.dimension_semantics<parallel>], iteration_bounds = array<i64: 1>, scalar_prefetch = 0 : i64, scratch_operands = 0 : i64, tpu.core_type = #tpu.core_type<tc>, window_params = [{transform_indices = @transform_0, window_bounds = array<i64: 16, 128>}, {pipeline_mode = #tpu.pipeline_mode<synchronous>, transform_indices = @transform_1, window_bounds = array<i64: 128, 128>}, {pipeline_mode = #tpu.pipeline_mode<synchronous>, transform_indices = @transform_2, window_bounds = array<i64: 1, 128>}, {pipeline_mode = #tpu.pipeline_mode<synchronous>, transform_indices = @transform_3, window_bounds = array<i64: 1, 128>}, {pipeline_mode = #tpu.pipeline_mode<synchronous>, transform_indices = @transform_4, window_bounds = array<i64: 1, 128>}, {pipeline_mode = #tpu.pipeline_mode<synchronous>, transform_indices = @transform_5, window_bounds = array<i64: 128, 128>}, {pipeline_mode = #tpu.pipeline_mode<synchronous>, transform_indices = @transform_6, window_bounds = array<i64: 1, 128>}, {pipeline_mode = #tpu.pipeline_mode<synchronous>, transform_indices = @transform_7, window_bounds = array<i64: 1, 128>}, {pipeline_mode = #tpu.pipeline_mode<synchronous>, transform_indices = @transform_8, window_bounds = array<i64: 1, 128>}, {pipeline_mode = #tpu.pipeline_mode<synchronous>, transform_indices = @transform_9, window_bounds = array<i64: 128, 128>}, {pipeline_mode = #tpu.pipeline_mode<synchronous>, transform_indices = @transform_10, window_bounds = array<i64: 1, 128>}, {transform_indices = @transform_11, window_bounds = array<i64: 16, 128>}]} {
    %c0 = arith.constant 0 : index
    %c0_0 = arith.constant 0 : index
    %0 = vector.load %arg1[%c0, %c0_0] : memref<16x128xbf16, #tpu.memory_space<vmem>>, vector<16x128xbf16>
    %c0_1 = arith.constant 0 : index
    %c0_2 = arith.constant 0 : index
    %1 = vector.load %arg2[%c0_1, %c0_2] : memref<128x128xbf16, #tpu.memory_space<vmem>>, vector<128x128xbf16>
    %cst = arith.constant dense<0.000000e+00> : vector<16x128xf32>
    %2 = tpu.matmul %0, %1, %cst {dimension_numbers = #tpu.dot_dimension_numbers<[1], [0], [0], [1], [0, 0, 1, 1], [], []>} : vector<16x128xbf16>, vector<128x128xbf16>, vector<16x128xf32> -> vector<16x128xf32>
    %c0_3 = arith.constant 0 : index
    %c0_4 = arith.constant 0 : index
    %3 = vector.load %arg3[%c0_3, %c0_4] : memref<1x128xf32, #tpu.memory_space<vmem>>, vector<1x128xf32>
    %4 = vector.broadcast %3 : vector<1x128xf32> to vector<16x128xf32>
    %5 = arith.addf %2, %4 : vector<16x128xf32>
    %c0_5 = arith.constant 0 : index
    %c0_6 = arith.constant 0 : index
    %6 = vector.load %arg4[%c0_5, %c0_6] : memref<1x128xf32, #tpu.memory_space<vmem>>, vector<1x128xf32>
    %c0_7 = arith.constant 0 : index
    %c0_8 = arith.constant 0 : index
    %7 = vector.load %arg5[%c0_7, %c0_8] : memref<1x128xf32, #tpu.memory_space<vmem>>, vector<1x128xf32>
    %cst_9 = arith.constant dense<0.000000e+00> : vector<16xf32>
    %8 = vector.multi_reduction <add>, %5, %cst_9 [1] : vector<16x128xf32> to vector<16xf32>
    %9 = vector.shape_cast %8 : vector<16xf32> to vector<16x1xf32>
    %cst_10 = arith.constant 1.562500e-02 : f32
    %10 = vector.broadcast %cst_10 : f32 to vector<16x1xf32>
    %11 = arith.mulf %9, %10 : vector<16x1xf32>
    %12 = vector.broadcast %11 : vector<16x1xf32> to vector<16x128xf32>
    %13 = arith.subf %5, %12 : vector<16x128xf32>
    %14 = arith.mulf %13, %13 : vector<16x128xf32>
    %cst_11 = arith.constant dense<0.000000e+00> : vector<16xf32>
    %15 = vector.multi_reduction <add>, %14, %cst_11 [1] : vector<16x128xf32> to vector<16xf32>
    %16 = vector.shape_cast %15 : vector<16xf32> to vector<16x1xf32>
    %cst_12 = arith.constant 6.400000e+01 : f32
    %17 = vector.broadcast %cst_12 : f32 to vector<16x1xf32>
    %18 = arith.mulf %17, %11 : vector<16x1xf32>
    %19 = arith.mulf %18, %11 : vector<16x1xf32>
    %20 = arith.subf %16, %19 : vector<16x1xf32>
    %cst_13 = arith.constant 1.562500e-02 : f32
    %21 = vector.broadcast %cst_13 : f32 to vector<16x1xf32>
    %22 = arith.mulf %20, %21 : vector<16x1xf32>
    %cst_14 = arith.constant 0.000000e+00 : f32
    %23 = vector.broadcast %cst_14 : f32 to vector<16x1xf32>
    %24 = arith.maximumf %22, %23 : vector<16x1xf32>
    %cst_15 = arith.constant 9.99999974E-6 : f32
    %25 = vector.broadcast %cst_15 : f32 to vector<16x1xf32>
    %26 = arith.addf %24, %25 : vector<16x1xf32>
    %27 = math.rsqrt %26 : vector<16x1xf32>
    %28 = vector.broadcast %27 : vector<16x1xf32> to vector<16x128xf32>
    %29 = arith.mulf %13, %28 : vector<16x128xf32>
    %30 = vector.broadcast %6 : vector<1x128xf32> to vector<16x128xf32>
    %31 = arith.mulf %29, %30 : vector<16x128xf32>
    %32 = vector.broadcast %7 : vector<1x128xf32> to vector<16x128xf32>
    %33 = arith.addf %31, %32 : vector<16x128xf32>
    %cst_16 = arith.constant 0.000000e+00 : f32
    %34 = vector.broadcast %cst_16 : f32 to vector<16x128xf32>
    %35 = arith.maximumf %33, %34 : vector<16x128xf32>
    %36 = arith.truncf %35 : vector<16x128xf32> to vector<16x128xbf16>
    %c0_17 = arith.constant 0 : index
    %c0_18 = arith.constant 0 : index
    %37 = vector.load %arg6[%c0_17, %c0_18] : memref<128x128xbf16, #tpu.memory_space<vmem>>, vector<128x128xbf16>
    %cst_19 = arith.constant dense<0.000000e+00> : vector<16x128xf32>
    %38 = tpu.matmul %36, %37, %cst_19 {dimension_numbers = #tpu.dot_dimension_numbers<[1], [0], [0], [1], [0, 0, 1, 1], [], []>} : vector<16x128xbf16>, vector<128x128xbf16>, vector<16x128xf32> -> vector<16x128xf32>
    %c0_20 = arith.constant 0 : index
    %c0_21 = arith.constant 0 : index
    %39 = vector.load %arg7[%c0_20, %c0_21] : memref<1x128xf32, #tpu.memory_space<vmem>>, vector<1x128xf32>
    %40 = vector.broadcast %39 : vector<1x128xf32> to vector<16x128xf32>
    %41 = arith.addf %38, %40 : vector<16x128xf32>
    %c0_22 = arith.constant 0 : index
    %c0_23 = arith.constant 0 : index
    %42 = vector.load %arg8[%c0_22, %c0_23] : memref<1x128xf32, #tpu.memory_space<vmem>>, vector<1x128xf32>
    %c0_24 = arith.constant 0 : index
    %c0_25 = arith.constant 0 : index
    %43 = vector.load %arg9[%c0_24, %c0_25] : memref<1x128xf32, #tpu.memory_space<vmem>>, vector<1x128xf32>
    %cst_26 = arith.constant dense<0.000000e+00> : vector<16xf32>
    %44 = vector.multi_reduction <add>, %41, %cst_26 [1] : vector<16x128xf32> to vector<16xf32>
    %45 = vector.shape_cast %44 : vector<16xf32> to vector<16x1xf32>
    %cst_27 = arith.constant 1.562500e-02 : f32
    %46 = vector.broadcast %cst_27 : f32 to vector<16x1xf32>
    %47 = arith.mulf %45, %46 : vector<16x1xf32>
    %48 = vector.broadcast %47 : vector<16x1xf32> to vector<16x128xf32>
    %49 = arith.subf %41, %48 : vector<16x128xf32>
    %50 = arith.mulf %49, %49 : vector<16x128xf32>
    %cst_28 = arith.constant dense<0.000000e+00> : vector<16xf32>
    %51 = vector.multi_reduction <add>, %50, %cst_28 [1] : vector<16x128xf32> to vector<16xf32>
    %52 = vector.shape_cast %51 : vector<16xf32> to vector<16x1xf32>
    %cst_29 = arith.constant 6.400000e+01 : f32
    %53 = vector.broadcast %cst_29 : f32 to vector<16x1xf32>
    %54 = arith.mulf %53, %47 : vector<16x1xf32>
    %55 = arith.mulf %54, %47 : vector<16x1xf32>
    %56 = arith.subf %52, %55 : vector<16x1xf32>
    %cst_30 = arith.constant 1.562500e-02 : f32
    %57 = vector.broadcast %cst_30 : f32 to vector<16x1xf32>
    %58 = arith.mulf %56, %57 : vector<16x1xf32>
    %cst_31 = arith.constant 0.000000e+00 : f32
    %59 = vector.broadcast %cst_31 : f32 to vector<16x1xf32>
    %60 = arith.maximumf %58, %59 : vector<16x1xf32>
    %cst_32 = arith.constant 9.99999974E-6 : f32
    %61 = vector.broadcast %cst_32 : f32 to vector<16x1xf32>
    %62 = arith.addf %60, %61 : vector<16x1xf32>
    %63 = math.rsqrt %62 : vector<16x1xf32>
    %64 = vector.broadcast %63 : vector<16x1xf32> to vector<16x128xf32>
    %65 = arith.mulf %49, %64 : vector<16x128xf32>
    %66 = vector.broadcast %42 : vector<1x128xf32> to vector<16x128xf32>
    %67 = arith.mulf %65, %66 : vector<16x128xf32>
    %68 = vector.broadcast %43 : vector<1x128xf32> to vector<16x128xf32>
    %69 = arith.addf %67, %68 : vector<16x128xf32>
    %cst_33 = arith.constant 0.000000e+00 : f32
    %70 = vector.broadcast %cst_33 : f32 to vector<16x128xf32>
    %71 = arith.maximumf %69, %70 : vector<16x128xf32>
    %72 = arith.truncf %71 : vector<16x128xf32> to vector<16x128xbf16>
    %c0_34 = arith.constant 0 : index
    %c0_35 = arith.constant 0 : index
    %73 = vector.load %arg10[%c0_34, %c0_35] : memref<128x128xbf16, #tpu.memory_space<vmem>>, vector<128x128xbf16>
    %cst_36 = arith.constant dense<0.000000e+00> : vector<16x128xf32>
    %74 = tpu.matmul %72, %73, %cst_36 {dimension_numbers = #tpu.dot_dimension_numbers<[1], [0], [0], [1], [0, 0, 1, 1], [], []>} : vector<16x128xbf16>, vector<128x128xbf16>, vector<16x128xf32> -> vector<16x128xf32>
    %c0_37 = arith.constant 0 : index
    %c0_38 = arith.constant 0 : index
    %75 = vector.load %arg11[%c0_37, %c0_38] : memref<1x128xf32, #tpu.memory_space<vmem>>, vector<1x128xf32>
    %76 = vector.broadcast %75 : vector<1x128xf32> to vector<16x128xf32>
    %77 = arith.addf %74, %76 : vector<16x128xf32>
    %c0_39 = arith.constant 0 : index
    %c0_40 = arith.constant 0 : index
    %78 = vector.load %arg12[%c0_39, %c0_40] : memref<16x128xf32, #tpu.memory_space<vmem>>, vector<16x128xf32>
    tpu.vector_store %arg12[%c0_39, %c0_40], %77 {strides = array<i32>} : memref<16x128xf32, #tpu.memory_space<vmem>>, vector<16x128xf32>,
    return
  }
  func.func @transform_0(%arg0: i32) -> (i32, i32) {
    %c0_i32 = arith.constant 0 : i32
    %c0_i32_0 = arith.constant 0 : i32
    return %arg0, %c0_i32 : i32, i32
  }
  func.func @transform_1(%arg0: i32) -> (i32, i32) {
    %c0_i32 = arith.constant 0 : i32
    %c0_i32_0 = arith.constant 0 : i32
    %c0_i32_1 = arith.constant 0 : i32
    return %c0_i32, %c0_i32_0 : i32, i32
  }
  func.func @transform_2(%arg0: i32) -> (i32, i32) {
    %c0_i32 = arith.constant 0 : i32
    %c0_i32_0 = arith.constant 0 : i32
    %c0_i32_1 = arith.constant 0 : i32
    return %c0_i32, %c0_i32_0 : i32, i32
  }
  func.func @transform_3(%arg0: i32) -> (i32, i32) {
    %c0_i32 = arith.constant 0 : i32
    %c0_i32_0 = arith.constant 0 : i32
    %c0_i32_1 = arith.constant 0 : i32
    return %c0_i32, %c0_i32_0 : i32, i32
  }
  func.func @transform_4(%arg0: i32) -> (i32, i32) {
    %c0_i32 = arith.constant 0 : i32
    %c0_i32_0 = arith.constant 0 : i32
    %c0_i32_1 = arith.constant 0 : i32
    return %c0_i32, %c0_i32_0 : i32, i32
  }
  func.func @transform_5(%arg0: i32) -> (i32, i32) {
    %c0_i32 = arith.constant 0 : i32
    %c0_i32_0 = arith.constant 0 : i32
    %c0_i32_1 = arith.constant 0 : i32
    return %c0_i32, %c0_i32_0 : i32, i32
  }
  func.func @transform_6(%arg0: i32) -> (i32, i32) {
    %c0_i32 = arith.constant 0 : i32
    %c0_i32_0 = arith.constant 0 : i32
    %c0_i32_1 = arith.constant 0 : i32
    return %c0_i32, %c0_i32_0 : i32, i32
  }
  func.func @transform_7(%arg0: i32) -> (i32, i32) {
    %c0_i32 = arith.constant 0 : i32
    %c0_i32_0 = arith.constant 0 : i32
    %c0_i32_1 = arith.constant 0 : i32
    return %c0_i32, %c0_i32_0 : i32, i32
  }
  func.func @transform_8(%arg0: i32) -> (i32, i32) {
    %c0_i32 = arith.constant 0 : i32
    %c0_i32_0 = arith.constant 0 : i32
    %c0_i32_1 = arith.constant 0 : i32
    return %c0_i32, %c0_i32_0 : i32, i32
  }
  func.func @transform_9(%arg0: i32) -> (i32, i32) {
    %c0_i32 = arith.constant 0 : i32
    %c0_i32_0 = arith.constant 0 : i32
    %c0_i32_1 = arith.constant 0 : i32
    return %c0_i32, %c0_i32_0 : i32, i32
  }
  func.func @transform_10(%arg0: i32) -> (i32, i32) {
    %c0_i32 = arith.constant 0 : i32
    %c0_i32_0 = arith.constant 0 : i32
    %c0_i32_1 = arith.constant 0 : i32
    return %c0_i32, %c0_i32_0 : i32, i32
  }
  func.func @transform_11(%arg0: i32) -> (i32, i32) {
    %c0_i32 = arith.constant 0 : i32
    %c0_i32_0 = arith.constant 0 : i32
    return %arg0, %c0_i32 : i32, i32
  }
}

</mosaic_0001>

<bundles_post_ra>
// kernel: tpu_custom_call.1
= control target key start
LH: loop header
LB: loop body
LE: loop exit
PB: predicated region body
PF: predicated region fallthrough
CT: control target
= control target key end

     0   :  { %16 = vsyncpa [#allocation3], 0  ;;  %s1051_s0 = inlined_call_operand.hbm [shape: bf16[16,128], index: 0, kind: input, shape index: {}]   ;;  %s1052_s1 = inlined_call_operand.hbm [shape: bf16[128,128], index: 1, kind: input, shape index: {}]   ;;  %s1053_s2 = inlined_call_operand.vmem [shape: f32[1,128], index: 2, kind: input, shape index: {}]   ;;  %s1054_s3 = inlined_call_operand.vmem [shape: f32[1,128], index: 3, kind: input, shape index: {}]   ;;  %s1055_s4 = inlined_call_operand.vmem [shape: f32[1,128], index: 4, kind: input, shape index: {}]   ;;  %s1056_s5 = inlined_call_operand.hbm [shape: bf16[128,128], index: 5, kind: input, shape index: {}]   ;;  %s1057_s6 = inlined_call_operand.vmem [shape: f32[1,128], index: 6, kind: input, shape index: {}]   ;;  %s1058_s7 = inlined_call_operand.vmem [shape: f32[1,128], index: 7, kind: input, shape index: {}]   ;;  %s1059_s8 = inlined_call_operand.vmem [shape: f32[1,128], index: 8, kind: input, shape index: {}]   ;;  %s1060_s9 = inlined_call_operand.hbm [shape: bf16[128,128], index: 9, kind: input, shape index: {}]   ;;  %s1061_s10 = inlined_call_operand.vmem [shape: f32[1,128], index: 10, kind: input, shape index: {}]   ;;  %s1062_s11 = inlined_call_operand.hbm [shape: f32[16,128], index: 11, kind: output, shape index: {}]  }
   0x1   :  { %17 = vsyncpa [#allocation6], 0 }
   0x2   :  { %18 = vsyncpa [#allocation9], 0 }
   0x3   :  { %19 = vsyncpa [#allocation4], 0  ;;  %s843_s17 = smov [#allocation5]   ;;  %s844_s19 = smov [#allocation2]  }
   0x4   :  { %s37_s18 = sshll.u32 %s843_s17, 4  ;;  %s25_s20 = sshll.u32 %s844_s19, 4  ;;  %s38_s18 = int_to_ptr.vmem [resolvable:$true] %s37_s18  ;;  %s914_s20 = int_to_ptr.vmem [resolvable:$true] %s25_s20 }
   0x5   :  { %s725_s23 = scalar_lea.hbm %s1052_s1, 1024 }
   0x6   :  { %p726_p0 = scmp.ne.s32.totalorder %s1052_s1, %s725_s23  ;;  %p729_p1 = scmp.lt.u32.totalorder %s725_s23, %s1052_s1 }
   0x8   :  { %p731_p2 = pnand %p729_p1, %p726_p0 }
   0xa   :  { %734 = shalt.err (!%p731_p2)
}
   0xb   :  { %s735_s28 = scalar_lea.vmem %s38_s18, 1024  ;;  %p740_p4 = scmp.lt.s32.totalorder %s38_s18, %s38_s18 }
   0xc   :  { %p736_p3 = scmp.ne.s32.totalorder %s38_s18, %s735_s28  ;;  %p741_p5 = scmp.lt.s32.totalorder %s735_s28, %s735_s28 }
   0xe   :  { %p742_p6 = por %p741_p5, %p740_p4 }
  0x10   :  { %p743_p7 = pnand %p742_p6, %p736_p3 }
  0x12   :  { %746 = shalt.err (!%p743_p7)
}
  0x13   :  { %s845_s29 = smov 64   ;;  %s846_s30 = smov 4  }
  0x14   :  { %43 = dma.hbm_to_vmem [thread:$0]  %s1052_s1, 1024, %s38_s18, [#allocation6], %s845_s29, %s845_s29, %s846_s30  }
  0x15   :  { %s747_s16 = scalar_lea.hbm %s1051_s0, 128 }
  0x16   :  { %p748_p8 = scmp.ne.s32.totalorder %s1051_s0, %s747_s16  ;;  %p751_p9 = scmp.lt.u32.totalorder %s747_s16, %s1051_s0 }
  0x18   :  { %p753_p10 = pnand %p751_p9, %p748_p8 }
  0x1a   :  { %756 = shalt.err (!%p753_p10)
}
  0x1b   :  { %s757_s23 = scalar_lea.vmem %s914_s20, 128  ;;  %p762_p12 = scmp.lt.s32.totalorder %s914_s20, %s914_s20 }
  0x1c   :  { %p758_p11 = scmp.ne.s32.totalorder %s914_s20, %s757_s23  ;;  %p763_p13 = scmp.lt.s32.totalorder %s757_s23, %s757_s23 }
  0x1e   :  { %p764_p0 = por %p763_p13, %p762_p12 }
  0x20   :  { %p765_p1 = pnand %p764_p0, %p758_p11 }
  0x22   :  { %768 = shalt.err (!%p765_p1)
}
  0x23   :  { %31 = dma.hbm_to_vmem [thread:$0]  %s1051_s0, 128, %s914_s20, [#allocation3], %s845_s29, %s845_s29, %s846_s30  }
  0x24   :  { %s847_s24 = smov [#allocation7]   ;;  %s848_s26 = smov [#allocation8]  }
  0x25   :  { %s55_s25 = sshll.u32 %s847_s24, 4  ;;  %s73_s27 = sshll.u32 %s848_s26, 4  ;;  %s56_s25 = int_to_ptr.vmem [resolvable:$true] %s55_s25  ;;  %s951_s27 = int_to_ptr.vmem [resolvable:$true] %s73_s27 }
  0x26   :  { %s769_s13 = scalar_lea.hbm %s1056_s5, 1024 }
  0x27   :  { %p770_p2 = scmp.ne.s32.totalorder %s1056_s5, %s769_s13  ;;  %p773_p3 = scmp.lt.u32.totalorder %s769_s13, %s1056_s5 }
  0x29   :  { %p775_p4 = pnand %p773_p3, %p770_p2 }
  0x2b   :  { %778 = shalt.err (!%p775_p4)
}
  0x2c   :  { %s779_s0 = scalar_lea.vmem %s56_s25, 1024  ;;  %p784_p6 = scmp.lt.s32.totalorder %s56_s25, %s56_s25 }
  0x2d   :  { %p780_p5 = scmp.ne.s32.totalorder %s56_s25, %s779_s0  ;;  %p785_p7 = scmp.lt.s32.totalorder %s779_s0, %s779_s0 }
  0x2f   :  { %p786_p8 = por %p785_p7, %p784_p6 }
  0x31   :  { %p787_p9 = pnand %p786_p8, %p780_p5 }
  0x33   :  { %790 = shalt.err (!%p787_p9)
}
  0x34   :  { %61 = dma.hbm_to_vmem [thread:$0]  %s1056_s5, 1024, %s56_s25, [#allocation6], %s845_s29, %s845_s29, %s846_s30  }
  0x35   :  { %s791_s23 = scalar_lea.hbm %s1060_s9, 1024 }
  0x36   :  { %p792_p10 = scmp.ne.s32.totalorder %s1060_s9, %s791_s23  ;;  %p795_p11 = scmp.lt.u32.totalorder %s791_s23, %s1060_s9 }
  0x38   :  { %p797_p12 = pnand %p795_p11, %p792_p10 }
  0x3a   :  { %800 = shalt.err (!%p797_p12)
}
  0x3b   :  { %s801_s28 = scalar_lea.vmem %s951_s27, 1024  ;;  %p806_p0 = scmp.lt.s32.totalorder %s951_s27, %s951_s27 }
  0x3c   :  { %p802_p13 = scmp.ne.s32.totalorder %s951_s27, %s801_s28  ;;  %p807_p1 = scmp.lt.s32.totalorder %s801_s28, %s801_s28 }
  0x3e   :  { %p808_p2 = por %p807_p1, %p806_p0 }
  0x40   :  { %p809_p3 = pnand %p808_p2, %p802_p13 }
  0x42   :  { %812 = shalt.err (!%p809_p3)
}
  0x43   :  { %79 = dma.hbm_to_vmem [thread:$0]  %s1060_s9, 1024, %s951_s27, [#allocation9], %s845_s29, %s845_s29, %s846_s30  }
  0x44   :  { %835 = dma.done.wait [#allocation3], 128  }
  0x45   :  { %836 = vsyncadd [#allocation3], 4294967168 }
  0x46   :  { %837 = dma.done.wait [#allocation6], 2048  }
  0x47   :  { %838 = vsyncadd [#allocation6], 4294965248 }
  0x48   :  { %839 = dma.done.wait [#allocation9], 1024  }
  0x49   :  { %840 = vsyncadd [#allocation9], 4294966272  ;;  %v849_v0 = vmov 0.0   ;;  %vm850_vm0 = vmmov 0   ;;  %v692_v1 = vld [vmem:[#allocation5] sm:$0xff]   ;;  %v693_v2 = vld [vmem:[#allocation5 + $0x8] sm:$0xff]  }
  0x4a   :  { %621 = vmatprep.subr.bf16.mxu0 %v849_v0  ;;  %637 = vmatprep.mubr.msk.bf16.mxu0 %vm850_vm0, %v849_v0  ;;  %v694_v3 = vld [vmem:[#allocation5 + $0x10] sm:$0xff]   ;;  %v695_v4 = vld [vmem:[#allocation5 + $0x18] sm:$0xff]   ;;  %v696_v5 = vld [vmem:[#allocation5 + $0x20] sm:$0xff]  }
  0x4b   :  { %641 = vmatprep.subr.bf16.mxu1 %v849_v0  ;;  %657 = vmatprep.mubr.msk.bf16.mxu1 %vm850_vm0, %v849_v0  ;;  %v697_v6 = vld [vmem:[#allocation5 + $0x28] sm:$0xff]   ;;  %v698_v7 = vld [vmem:[#allocation5 + $0x30] sm:$0xff]   ;;  %v699_v8 = vld [vmem:[#allocation5 + $0x38] sm:$0xff]  }
  0x4c   :  { %622 = vmatpush3.bf16.msra.mxu0 %v692_v1  ;;  %v700_v9 = vld [vmem:[#allocation2] sm:$0xff]   ;;  %v701_v25 = vld [vmem:[#allocation7] sm:$0xff]   ;;  %v702_v26 = vld [vmem:[#allocation7 + $0x8] sm:$0xff]  }
  0x4d   :  { %623 = vmatprep.subr.bf16.mxu0 %v849_v0  ;;  %v562_v10 = vld [vmem:[%s1053_s2] ss:$0 sm:$0xff]  ;;  %642 = vmatpush3.bf16.msra.mxu1 %v701_v25  ;;  %v703_v27 = vld [vmem:[#allocation7 + $0x10] sm:$0xff]   ;;  %v705_v29 = vld [vmem:[#allocation7 + $0x20] sm:$0xff]  }
  0x4e   :  { %643 = vmatprep.subr.bf16.mxu1 %v849_v0  ;;  %v704_v28 = vld [vmem:[#allocation7 + $0x18] sm:$0xff]   ;;  %v706_v30 = vld [vmem:[#allocation7 + $0x28] sm:$0xff]   ;;  %v707_v31 = vld [vmem:[#allocation7 + $0x30] sm:$0xff]  }
  0x4f   :  { %v708_v32 = vld [vmem:[#allocation7 + $0x38] sm:$0xff]  }
  0x50   :  { %624 = vmatpush3.bf16.msra.mxu0 %v693_v2  ;;  %v572_v48 = vld [vmem:[%s1054_s3] ss:$0 sm:$0xff] }
  0x51   :  { %625 = vmatprep.subr.bf16.mxu0 %v849_v0  ;;  %644 = vmatpush3.bf16.msra.mxu1 %v702_v26  ;;  %v573_v52 = vld [vmem:[%s1055_s4] ss:$0 sm:$0xff] }
  0x52   :  { %645 = vmatprep.subr.bf16.mxu1 %v849_v0  ;;  %v574_v60 = vld [vmem:[%s1057_s6] ss:$0 sm:$0xff] }
  0x54   :  { %626 = vmatpush3.bf16.msra.mxu0 %v694_v3 }
  0x55   :  { %627 = vmatprep.subr.bf16.mxu0 %v849_v0  ;;  %646 = vmatpush3.bf16.msra.mxu1 %v703_v27 }
  0x56   :  { %647 = vmatprep.subr.bf16.mxu1 %v849_v0 }
  0x58   :  { %628 = vmatpush3.bf16.msra.mxu0 %v695_v4 }
  0x59   :  { %629 = vmatprep.subr.bf16.mxu0 %v849_v0  ;;  %648 = vmatpush3.bf16.msra.mxu1 %v704_v28 }
  0x5a   :  { %649 = vmatprep.subr.bf16.mxu1 %v849_v0 }
  0x5c   :  { %630 = vmatpush3.bf16.msra.mxu0 %v696_v5 }
  0x5d   :  { %631 = vmatprep.subr.bf16.mxu0 %v849_v0  ;;  %650 = vmatpush3.bf16.msra.mxu1 %v705_v29 }
  0x5e   :  { %651 = vmatprep.subr.bf16.mxu1 %v849_v0 }
  0x60   :  { %632 = vmatpush3.bf16.msra.mxu0 %v697_v6 }
  0x61   :  { %633 = vmatprep.subr.bf16.mxu0 %v849_v0  ;;  %652 = vmatpush3.bf16.msra.mxu1 %v706_v30 }
  0x62   :  { %653 = vmatprep.subr.bf16.mxu1 %v849_v0 }
  0x64   :  { %634 = vmatpush3.bf16.msra.mxu0 %v698_v7 }
  0x65   :  { %635 = vmatprep.subr.bf16.mxu0 %v849_v0  ;;  %654 = vmatpush3.bf16.msra.mxu1 %v707_v31 }
  0x66   :  { %655 = vmatprep.subr.bf16.mxu1 %v849_v0 }
  0x68   :  { %636 = vmatpush3.bf16.msra.mxu0 %v699_v8 }
  0x69   :  { %661 = vmatprep.subr.bf16.mxu0 %v849_v0  ;;  %656 = vmatpush3.bf16.msra.mxu1 %v708_v32 }
  0x6b   :  { %638 = vmatmul.mubr.bf16.vlgmr.msra.gmra.mrb[0].mxu0 %v700_v9 }
  0x6c   :  { %677 = vmatprep.mubr.msk.bf16.mxu0 %vm850_vm0, %v849_v0 }
 0x13e   :  { %v208_v11 = vpop.f32.mrb[0].mxu0 }
 0x13f   :  { %v209_v12 = vadd.f32 %v562_v10, %v208_v11  ;;  %v639_v13 = vpop.f32.mrb[1].mxu0 }
 0x140   :  { %v211_v14 = vpop.f32.mrb[2].mxu0  ;;  %v710_v13 = vld [vmem:[#allocation8 + $0x8] sm:$0xff]  }
 0x141   :  { %217 = vadd.xlane.f32.xlu0 %v209_v12  ;;  %v640_v15 = vpop.f32.mrb[3].mxu0  ;;  %v212_v16 = vadd.f32 %v562_v10, %v211_v14  ;;  %v711_v14 = vld [vmem:[#allocation8 + $0x10] sm:$0xff]  }
 0x142   :  { %v712_v15 = vld [vmem:[#allocation8 + $0x18] sm:$0xff]  }
 0x145   :  { %219 = vadd.xlane.f32.xlu0 %v212_v16 }
 0x1ce   :  { %v218_v17 = vpop.xlane.xlu0 %217 }
 0x1cf   :  { %v221_v18 = vmul.f32 0.015625, %v218_v17  ;;  %v714_v17 = vld [vmem:[#allocation8 + $0x28] sm:$0xff]  }
 0x1d1   :  { %v223_v19 = vsub.f32 %v209_v12, %v221_v18  ;;  %v231_v33 = vmul.f32 64.0, %v221_v18  ;;  %v709_v12 = vld [vmem:[#allocation8] sm:$0xff]  }
 0x1d2   :  { %v220_v20 = vpop.xlane.xlu0 %219  ;;  %662 = vmatpush3.bf16.msra.mxu0 %v709_v12 }
 0x1d3   :  { %v222_v21 = vmul.f32 0.015625, %v220_v20  ;;  %v225_v22 = vmul.f32 %v223_v19, %v223_v19  ;;  %v233_v34 = vmul.f32 %v231_v33, %v221_v18  ;;  %663 = vmatprep.subr.bf16.mxu0 %v849_v0  ;;  %v715_v18 = vld [vmem:[#allocation8 + $0x30] sm:$0xff]  }
 0x1d5   :  { %227 = vadd.xlane.f32.xlu1 %v225_v22  ;;  %v224_v23 = vsub.f32 %v212_v16, %v222_v21  ;;  %v232_v35 = vmul.f32 64.0, %v222_v21  ;;  %v713_v16 = vld [vmem:[#allocation8 + $0x20] sm:$0xff]  }
 0x1d6   :  { %664 = vmatpush3.bf16.msra.mxu0 %v710_v13 }
 0x1d7   :  { %v226_v24 = vmul.f32 %v224_v23, %v224_v23  ;;  %v234_v39 = vmul.f32 %v232_v35, %v222_v21  ;;  %665 = vmatprep.subr.bf16.mxu0 %v849_v0 }
 0x1d9   :  { %229 = vadd.xlane.f32.xlu1 %v226_v24 }
 0x1da   :  { %666 = vmatpush3.bf16.msra.mxu0 %v711_v14 }
 0x1db   :  { %667 = vmatprep.subr.bf16.mxu0 %v849_v0 }
 0x1de   :  { %668 = vmatpush3.bf16.msra.mxu0 %v712_v15 }
 0x1df   :  { %669 = vmatprep.subr.bf16.mxu0 %v849_v0 }
 0x1e2   :  { %670 = vmatpush3.bf16.msra.mxu0 %v713_v16 }
 0x1e3   :  { %671 = vmatprep.subr.bf16.mxu0 %v849_v0 }
 0x1e6   :  { %672 = vmatpush3.bf16.msra.mxu0 %v714_v17 }
 0x1e7   :  { %673 = vmatprep.subr.bf16.mxu0 %v849_v0 }
 0x1ea   :  { %674 = vmatpush3.bf16.msra.mxu0 %v715_v18 }
 0x1eb   :  { %675 = vmatprep.subr.bf16.mxu0 %v849_v0  ;;  %v583_v0 = vld [vmem:[%s1058_s7] ss:$0 sm:$0xff]  ;;  %s851_s7 = smov [#allocation10]  }
 0x1ec   :  { %s548_s0 = sshll.u32 %s851_s7, 4  ;;  %s549_s0 = int_to_ptr.vmem [resolvable:$true] %s548_s0 }
 0x1ed   :  { %p818_p5 = scmp.lt.s32.totalorder %s549_s0, %s549_s0 }
 0x262   :  { %v228_v36 = vpop.xlane.xlu1 %227 }
 0x263   :  { %v235_v37 = vsub.f32 %v228_v36, %v233_v34 }
 0x265   :  { %v237_v38 = vmul.f32 0.015625, %v235_v37  ;;  %v584_v37 = vld [vmem:[%s1059_s8] ss:$0 sm:$0xff]  ;;  %s813_s8 = scalar_lea.vmem %s549_s0, 256 }
 0x266   :  { %v230_v40 = vpop.xlane.xlu1 %229  ;;  %p814_p4 = scmp.ne.s32.totalorder %s549_s0, %s813_s8  ;;  %p819_p6 = scmp.lt.s32.totalorder %s813_s8, %s813_s8 }
 0x267   :  { %v239_v41 = vmax.f32 %v237_v38, 0.0  ;;  %v236_v42 = vsub.f32 %v230_v40, %v234_v39 }
 0x268   :  { %p820_p7 = por %p819_p6, %p818_p5 }
 0x269   :  { %v241_v43 = vadd.f32 1e-05, %v239_v41  ;;  %v238_v44 = vmul.f32 0.015625, %v236_v42 }
 0x26a   :  { %p821_p8 = pnand %p820_p7, %p814_p4 }
 0x26b   :  { %717 = vrsqrt.f32 %v241_v43  ;;  %v240_v45 = vmax.f32 %v238_v44, 0.0 }
 0x26d   :  { %v242_v46 = vadd.f32 1e-05, %v240_v45 }
 0x26f   :  { %719 = vrsqrt.f32 %v242_v46  ;;  %v585_v46 = vld [vmem:[%s1061_s10] ss:$0 sm:$0xff] }
 0x275   :  { %v718_v47 = vpop.eup %717 }
 0x276   :  { %v245_v49 = vmul.f32 %v718_v47, %v223_v19  ;;  %v716_v19 = vld [vmem:[#allocation8 + $0x38] sm:$0xff]  }
 0x277   :  { %676 = vmatpush3.bf16.msra.mxu0 %v716_v19 }
 0x278   :  { %v253_v50 = vmul.f32 %v572_v48, %v245_v49 }
 0x279   :  { %v720_v51 = vpop.eup %719 }
 0x27a   :  { %v246_v53 = vmul.f32 %v720_v51, %v224_v23  ;;  %v261_v55 = vadd.f32 %v573_v52, %v253_v50 }
 0x27c   :  { %v254_v54 = vmul.f32 %v572_v48, %v246_v53  ;;  %v263_v57 = vmax.f32 %v261_v55, 0.0 }
 0x27e   :  { %v262_v56 = vadd.f32 %v573_v52, %v254_v54 }
 0x280   :  { %v264_v58 = vmax.f32 %v262_v56, 0.0 }
 0x282   :  { %v265_v59 = vpack.c.bf16 %v264_v58, %v263_v57 }
 0x284   :  { %658 = vmatmul.mubr.bf16.vlgmr.msra.gmra.mrb[0].mxu1 %v265_v59 }
 0x357   :  { %v371_v61 = vpop.f32.mrb[0].mxu1 }
 0x358   :  { %v372_v62 = vadd.f32 %v574_v60, %v371_v61  ;;  %v659_v63 = vpop.f32.mrb[1].mxu1 }
 0x359   :  { %v374_v1 = vpop.f32.mrb[2].mxu1 }
 0x35a   :  { %v375_v2 = vadd.f32 %v574_v60, %v374_v1  ;;  %380 = vadd.xlane.f32.xlu0 %v372_v62  ;;  %v660_v3 = vpop.f32.mrb[3].mxu1 }
 0x35c   :  { %382 = vadd.xlane.f32.xlu1 %v375_v2 }
 0x3e7   :  { %v381_v4 = vpop.xlane.xlu0 %380 }
 0x3e8   :  { %v384_v5 = vmul.f32 0.015625, %v381_v4 }
 0x3e9   :  { %v383_v6 = vpop.xlane.xlu1 %382 }
 0x3ea   :  { %v385_v7 = vmul.f32 0.015625, %v383_v6  ;;  %v386_v8 = vsub.f32 %v372_v62, %v384_v5  ;;  %v394_v20 = vmul.f32 64.0, %v384_v5 }
 0x3ec   :  { %v388_v9 = vmul.f32 %v386_v8, %v386_v8  ;;  %v387_v10 = vsub.f32 %v375_v2, %v385_v7  ;;  %v395_v21 = vmul.f32 64.0, %v385_v7  ;;  %v396_v22 = vmul.f32 %v394_v20, %v384_v5 }
 0x3ee   :  { %390 = vadd.xlane.f32.xlu0 %v388_v9  ;;  %v389_v11 = vmul.f32 %v387_v10, %v387_v10  ;;  %v397_v25 = vmul.f32 %v395_v21, %v385_v7 }
 0x3f0   :  { %392 = vadd.xlane.f32.xlu1 %v389_v11 }
 0x47b   :  { %v391_v23 = vpop.xlane.xlu0 %390 }
 0x47c   :  { %v398_v24 = vsub.f32 %v391_v23, %v396_v22 }
 0x47d   :  { %v393_v26 = vpop.xlane.xlu1 %392 }
 0x47e   :  { %v400_v27 = vmul.f32 0.015625, %v398_v24  ;;  %v399_v28 = vsub.f32 %v393_v26, %v397_v25 }
 0x480   :  { %v402_v29 = vmax.f32 %v400_v27, 0.0  ;;  %v401_v30 = vmul.f32 0.015625, %v399_v28 }
 0x482   :  { %v404_v31 = vadd.f32 1e-05, %v402_v29  ;;  %v403_v32 = vmax.f32 %v401_v30, 0.0 }
 0x484   :  { %721 = vrsqrt.f32 %v404_v31  ;;  %v405_v33 = vadd.f32 1e-05, %v403_v32 }
 0x486   :  { %723 = vrsqrt.f32 %v405_v33 }
 0x48e   :  { %v722_v34 = vpop.eup %721 }
 0x48f   :  { %v408_v35 = vmul.f32 %v722_v34, %v386_v8 }
 0x490   :  { %v724_v36 = vpop.eup %723 }
 0x491   :  { %v409_v38 = vmul.f32 %v724_v36, %v387_v10  ;;  %v416_v39 = vmul.f32 %v583_v0, %v408_v35 }
 0x493   :  { %v417_v40 = vmul.f32 %v583_v0, %v409_v38  ;;  %v424_v41 = vadd.f32 %v584_v37, %v416_v39 }
 0x495   :  { %v425_v42 = vadd.f32 %v584_v37, %v417_v40  ;;  %v426_v43 = vmax.f32 %v424_v41, 0.0 }
 0x497   :  { %v427_v44 = vmax.f32 %v425_v42, 0.0 }
 0x499   :  { %v428_v45 = vpack.c.bf16 %v427_v44, %v426_v43 }
 0x49b   :  { %678 = vmatmul.mubr.bf16.vlgmr.msra.gmra.mrb[4].mxu0 %v428_v45 }
 0x56e   :  { %v534_v47 = vpop.f32.mrb[4].mxu0 }
 0x56f   :  { %v535_v48 = vadd.f32 %v585_v46, %v534_v47  ;;  %v679_v49 = vpop.f32.mrb[5].mxu0 }
 0x570   :  { %v537_v50 = vpop.f32.mrb[6].mxu0 }
 0x571   :  { %541 = vst [vmem:[#allocation10] sm:$0xff] %v535_v48  ;;  %v538_v51 = vadd.f32 %v585_v46, %v537_v50  ;;  %v680_v52 = vpop.f32.mrb[7].mxu0 }
 0x573   :  { %542 = vst [vmem:[#allocation10 + $0x8] sm:$0xff] %v538_v51 }
 0x574   :  { %824 = shalt.err (!%p821_p8)
}
 0x575   :  { %s825_s19 = scalar_lea.hbm %s1062_s11, 256 }
 0x576   :  { %p826_p9 = scmp.ne.s32.totalorder %s1062_s11, %s825_s19  ;;  %p829_p10 = scmp.lt.u32.totalorder %s825_s19, %s1062_s11 }
 0x578   :  { %p831_p11 = pnand %p829_p10, %p826_p9 }
 0x57a   :  { %834 = shalt.err (!%p831_p11)
}
 0x57b   :  { %s852_s18 = smov 128   ;;  %s853_s24 = smov 8  }
 0x57c   :  { %554 = dma.vmem_to_hbm [thread:$0]  %s549_s0, 256, %s1062_s11, [#allocation4], %s852_s18, %s852_s18, %s853_s24  }
 0x57d   :  { %841 = dma.done.wait [#allocation4], 256  }
 0x57e   :  { %842 = vsyncadd [#allocation4], 4294967040 }
 0x57f   :  { %558 = vsyncpa [#allocation3], 1 }
 0x580   :  { %559 = vsyncpa [#allocation6], 1 }
 0x581   :  { %560 = vsyncpa [#allocation9], 1 }
 0x582   :  { %561 = vsyncpa [#allocation4], 1 }

</bundles_post_ra>
